<compile_context>
chip_gen: v6e
topology: v6e:2x2x1
jax: 0.10.0
libtpu: 0.0.40
codegen_flags: <defaults>
</compile_context>

<pallas_src>
import jax
import jax.numpy as jnp
from jax.experimental import pallas as pl
from jax.experimental.pallas import tpu as pltpu

# ---- module hyper-parameters (synthetic, defined in-script) ----
VOCABULARY_SIZE = 64
EMBEDDING_DIM = 128        # lane-aligned embedding width
CONTEXT_SIZE = 16
PE_N = 10000.0


def _embedding_kernel(ids_ref, pos_ref, emb_ref, pe_ref, out_ref):
    # ids_ref: (BS, 1) int32 token ids (flattened batch*seq)
    # pos_ref: (BS, 1) int32 sequence positions (row r -> r % S)
    # emb_ref: (V, D)  f32 token-embedding table (fully resident in VMEM)
    # pe_ref:  (S, D)  f32 positional-embedding rows for this sequence length
    # out_ref: (BS, D) f32 output block (single dense store)
    bs = ids_ref.shape[0]
    v, _ = emb_ref.shape
    s = pe_ref.shape[0]

    ids = ids_ref[...]                                        # (BS, 1)
    pos = pos_ref[...]                                        # (BS, 1)

    # One-hot gather of token embeddings on the MXU.
    vocab_iota = jax.lax.broadcasted_iota(jnp.int32, (bs, v), 1)
    one_hot_tok = (vocab_iota == ids).astype(jnp.float32)     # (BS, V)
    tok_emb = jnp.dot(one_hot_tok, emb_ref[...],
                      preferred_element_type=jnp.float32)     # (BS, D)

    # One-hot gather of positional embeddings (broadcast over batch).
    pos_iota = jax.lax.broadcasted_iota(jnp.int32, (bs, s), 1)
    one_hot_pos = (pos_iota == pos).astype(jnp.float32)       # (BS, S)
    pos_emb = jnp.dot(one_hot_pos, pe_ref[...],
                      preferred_element_type=jnp.float32)     # (BS, D)

    out_ref[...] = (tok_emb + pos_emb).astype(out_ref.dtype)


def embedding_layer(token_ids, emb_table, pe_table):
    """token_ids: (B, S) int32; emb_table: (V, D) f32; pe_table: (C, D) f32."""
    B, S = token_ids.shape
    V, D = emb_table.shape
    BS = B * S

    ids_flat = token_ids.reshape(BS, 1).astype(jnp.int32)
    pos_flat = jnp.tile(jnp.arange(S, dtype=jnp.int32), B).reshape(BS, 1)
    pe = pe_table[:S]                                          # (S, D)

    out_flat = pl.pallas_call(
        _embedding_kernel,
        grid=(1,),
        in_specs=[
            pl.BlockSpec((BS, 1), lambda i: (0, 0)),           # ids   (full)
            pl.BlockSpec((BS, 1), lambda i: (0, 0)),           # pos   (full)
            pl.BlockSpec((V, D), lambda i: (0, 0)),            # table (full)
            pl.BlockSpec((S, D), lambda i: (0, 0)),            # pe    (full)
        ],
        out_specs=pl.BlockSpec((BS, D), lambda i: (0, 0)),
        out_shape=jax.ShapeDtypeStruct((BS, D), emb_table.dtype),
        compiler_params=pltpu.CompilerParams(
            dimension_semantics=("parallel",)
        ),
    )(ids_flat, pos_flat, emb_table, pe)

    return out_flat.reshape(B, S, D)


def make_positional_embedding():
    # Matches the PyTorch PositionalEmbedding.__init__ construction.
    positions = jnp.arange(CONTEXT_SIZE, dtype=jnp.float32)[:, None]
    div_term = jnp.exp(
        jnp.arange(0, EMBEDDING_DIM, 2, dtype=jnp.float32)
        * -(jnp.log(jnp.float32(PE_N)) / EMBEDDING_DIM)
    )[None, :]
    pe = jnp.zeros((CONTEXT_SIZE, EMBEDDING_DIM), dtype=jnp.float32)
    pe = pe.at[:, 0::2].set(jnp.sin(positions * div_term))
    pe = pe.at[:, 1::2].set(jnp.cos(positions * div_term))
    return pe


if __name__ == "__main__":
    key = jax.random.PRNGKey(0)
    k_emb, k_ids = jax.random.split(key)

    # nn.Embedding default init: N(0, 1)
    emb_table = jax.random.normal(
        k_emb, (VOCABULARY_SIZE, EMBEDDING_DIM), dtype=jnp.float32
    )
    pe_table = make_positional_embedding()

    B, S = 2, 8
    token_ids = jax.random.randint(
        k_ids, (B, S), 0, VOCABULARY_SIZE, dtype=jnp.int32
    )

    out = embedding_layer(token_ids, emb_table, pe_table)
    out = jax.block_until_ready(out)

    # reference check (plain JAX): emb_table[x] + pe[:S]
    ref = emb_table[token_ids] + pe_table[:S][None, :, :]
    assert out.shape == (B, S, EMBEDDING_DIM)
    assert jnp.allclose(out, ref, atol=1e-6), "mismatch vs reference"

    print("KERNEL_OK")
</pallas_src>

<mosaic_0001>
module attributes {stable_mosaic.version = 11 : i64} {
  func.func @_embedding_kernel(%arg0: i32, %arg1: memref<16x1xi32, #tpu.memory_space<vmem>>, %arg2: memref<16x1xi32, #tpu.memory_space<vmem>>, %arg3: memref<64x128xf32, #tpu.memory_space<vmem>>, %arg4: memref<8x128xf32, #tpu.memory_space<vmem>>, %arg5: memref<16x128xf32, #tpu.memory_space<vmem>>) attributes {dimension_semantics = [#tpu.dimension_semantics<parallel>], iteration_bounds = array<i64: 1>, scalar_prefetch = 0 : i64, scratch_operands = 0 : i64, tpu.core_type = #tpu.core_type<tc>, window_params = [{pipeline_mode = #tpu.pipeline_mode<synchronous>, transform_indices = @transform_0, window_bounds = array<i64: 16, 1>}, {pipeline_mode = #tpu.pipeline_mode<synchronous>, transform_indices = @transform_1, window_bounds = array<i64: 16, 1>}, {pipeline_mode = #tpu.pipeline_mode<synchronous>, transform_indices = @transform_2, window_bounds = array<i64: 64, 128>}, {pipeline_mode = #tpu.pipeline_mode<synchronous>, transform_indices = @transform_3, window_bounds = array<i64: 8, 128>}, {pipeline_mode = #tpu.pipeline_mode<synchronous>, transform_indices = @transform_4, window_bounds = array<i64: 16, 128>}]} {
    %c0 = arith.constant 0 : index
    %c0_0 = arith.constant 0 : index
    %0 = vector.load %arg1[%c0, %c0_0] : memref<16x1xi32, #tpu.memory_space<vmem>>, vector<16x1xi32>
    %c0_1 = arith.constant 0 : index
    %c0_2 = arith.constant 0 : index
    %1 = vector.load %arg2[%c0_1, %c0_2] : memref<16x1xi32, #tpu.memory_space<vmem>>, vector<16x1xi32>
    %2 = tpu.iota {dimensions = array<i32: 1>} : vector<16x64xi32>
    %3 = vector.broadcast %0 : vector<16x1xi32> to vector<16x64xi32>
    %4 = arith.cmpi eq, %2, %3 : vector<16x64xi32>
    %5 = arith.extui %4 : vector<16x64xi1> to vector<16x64xi32>
    %6 = arith.sitofp %5 : vector<16x64xi32> to vector<16x64xf32>
    %c0_3 = arith.constant 0 : index
    %c0_4 = arith.constant 0 : index
    %7 = vector.load %arg3[%c0_3, %c0_4] : memref<64x128xf32, #tpu.memory_space<vmem>>, vector<64x128xf32>
    %cst = arith.constant dense<0.000000e+00> : vector<16x128xf32>
    %8 = tpu.matmul %6, %7, %cst {dimension_numbers = #tpu.dot_dimension_numbers<[1], [0], [0], [1], [0, 0, 1, 1], [], []>} : vector<16x64xf32>, vector<64x128xf32>, vector<16x128xf32> -> vector<16x128xf32>
    %9 = tpu.iota {dimensions = array<i32: 1>} : vector<16x8xi32>
    %10 = vector.broadcast %1 : vector<16x1xi32> to vector<16x8xi32>
    %11 = arith.cmpi eq, %9, %10 : vector<16x8xi32>
    %12 = arith.extui %11 : vector<16x8xi1> to vector<16x8xi32>
    %13 = arith.sitofp %12 : vector<16x8xi32> to vector<16x8xf32>
    %c0_5 = arith.constant 0 : index
    %c0_6 = arith.constant 0 : index
    %14 = vector.load %arg4[%c0_5, %c0_6] : memref<8x128xf32, #tpu.memory_space<vmem>>, vector<8x128xf32>
    %cst_7 = arith.constant dense<0.000000e+00> : vector<16x128xf32>
    %15 = tpu.matmul %13, %14, %cst_7 {dimension_numbers = #tpu.dot_dimension_numbers<[1], [0], [0], [1], [0, 0, 1, 1], [], []>} : vector<16x8xf32>, vector<8x128xf32>, vector<16x128xf32> -> vector<16x128xf32>
    %16 = arith.addf %8, %15 : vector<16x128xf32>
    %c0_8 = arith.constant 0 : index
    %c0_9 = arith.constant 0 : index
    %17 = vector.load %arg5[%c0_8, %c0_9] : memref<16x128xf32, #tpu.memory_space<vmem>>, vector<16x128xf32>
    tpu.vector_store %arg5[%c0_8, %c0_9], %16 {strides = array<i32>} : memref<16x128xf32, #tpu.memory_space<vmem>>, vector<16x128xf32>,
    return
  }
  func.func @transform_0(%arg0: i32) -> (i32, i32) {
    %c0_i32 = arith.constant 0 : i32
    %c0_i32_0 = arith.constant 0 : i32
    %c0_i32_1 = arith.constant 0 : i32
    return %c0_i32, %c0_i32_0 : i32, i32
  }
  func.func @transform_1(%arg0: i32) -> (i32, i32) {
    %c0_i32 = arith.constant 0 : i32
    %c0_i32_0 = arith.constant 0 : i32
    %c0_i32_1 = arith.constant 0 : i32
    return %c0_i32, %c0_i32_0 : i32, i32
  }
  func.func @transform_2(%arg0: i32) -> (i32, i32) {
    %c0_i32 = arith.constant 0 : i32
    %c0_i32_0 = arith.constant 0 : i32
    %c0_i32_1 = arith.constant 0 : i32
    return %c0_i32, %c0_i32_0 : i32, i32
  }
  func.func @transform_3(%arg0: i32) -> (i32, i32) {
    %c0_i32 = arith.constant 0 : i32
    %c0_i32_0 = arith.constant 0 : i32
    %c0_i32_1 = arith.constant 0 : i32
    return %c0_i32, %c0_i32_0 : i32, i32
  }
  func.func @transform_4(%arg0: i32) -> (i32, i32) {
    %c0_i32 = arith.constant 0 : i32
    %c0_i32_0 = arith.constant 0 : i32
    %c0_i32_1 = arith.constant 0 : i32
    return %c0_i32, %c0_i32_0 : i32, i32
  }
}

</mosaic_0001>

<bundles_post_ra>
// kernel: tpu_custom_call.1
= control target key start
LH: loop header
LB: loop body
LE: loop exit
PB: predicated region body
PF: predicated region fallthrough
CT: control target
= control target key end

     0   :  { %9 = vsyncpa [#allocation3], 0  ;;  %s409_s0 = inlined_call_operand.vmem [shape: s32[16,1], index: 0, kind: input, shape index: {}]   ;;  %s410_s1 = inlined_call_operand.vmem [shape: s32[16,1], index: 1, kind: input, shape index: {}]   ;;  %s411_s2 = inlined_call_operand.hbm [shape: f32[64,128], index: 2, kind: input, shape index: {}]   ;;  %s412_s3 = inlined_call_operand.vmem [shape: f32[8,128], index: 3, kind: input, shape index: {}]   ;;  %s413_s4 = inlined_call_operand.hbm [shape: f32[16,128], index: 4, kind: output, shape index: {}]  }
   0x1   :  { %10 = vsyncpa [#allocation4], 0  ;;  %s351_s15 = smov [#allocation2]  }
   0x2   :  { %s20_s16 = sshll.u32 %s351_s15, 4  ;;  %s21_s16 = int_to_ptr.vmem [resolvable:$true] %s20_s16 }
   0x3   :  { %s315_s17 = scalar_lea.vmem %s21_s16, 1024  ;;  %p320_p1 = scmp.lt.s32.totalorder %s21_s16, %s21_s16 }
   0x4   :  { %p316_p0 = scmp.ne.s32.totalorder %s21_s16, %s315_s17  ;;  %p321_p2 = scmp.lt.s32.totalorder %s315_s17, %s315_s17 }
   0x6   :  { %p322_p3 = por %p321_p2, %p320_p1 }
   0x8   :  { %p323_p4 = pnand %p322_p3, %p316_p0 }
   0xa   :  { %326 = shalt.err (!%p323_p4)
}
   0xb   :  { %s352_s18 = smov 128   ;;  %s353_s19 = smov 8  }
   0xc   :  { %26 = dma.hbm_to_vmem [thread:$0]  %s411_s2, 1024, %s21_s16, [#allocation3], %s352_s18, %s352_s18, %s353_s19  }
   0xd   :  { %347 = dma.done.wait [#allocation3], 1024  }
   0xe   :  { %348 = vsyncadd [#allocation3], 4294966272  ;;  %v354_v0 = vmov 0   ;;  %v33_v1 = vld [vmem:[%s409_s0 + $0x8] sm:$0xff]  ;;  %v32_v2 = vld [vmem:[%s409_s0] sm:$0xff]  ;;  %v36_v14 = vlaneseq  ;;  %vm153_vm0 = vcmask 523264  }
   0xf   :  { %306 = vset.pattern.permute.xlu1 %v354_v0  ;;  %305 = vset.pattern.permute.xlu0 %v354_v0  ;;  %v57_v3 = vld [vmem:[#allocation2 + $0x38] sm:$0xff]  ;;  %v56_v4 = vld [vmem:[#allocation2 + $0x30] sm:$0xff]  ;;  %v35_v5 = vld [vmem:[%s410_s1 + $0x8] sm:$0xff]  ;;  %v355_v18 = vmov 0.0   ;;  %vm71_vm3 = vcmask 64512   ;;  %s356_s0 = smov [#allocation5]  }
  0x10   :  { %42 = vperm.xlu1 %306, %v33_v1   ;;  %39 = vperm.xlu0 %305, %v32_v2   ;;  %v34_v6 = vld [vmem:[%s410_s1] sm:$0xff]  ;;  %v55_v7 = vld [vmem:[#allocation2 + $0x28] sm:$0xff]  ;;  %v53_v10 = vld [vmem:[#allocation2 + $0x18] sm:$0xff]  ;;  %v37_v15 = vand.u32 127, %v36_v14  ;;  %s242_s1 = sshll.u32 %s356_s0, 4  ;;  %s243_s1 = int_to_ptr.vmem [resolvable:$true] %s242_s1 }
  0x11   :  { %280 = vmatprep.subr.mxu1 %v57_v3  ;;  %v70_v8 = vld [vmem:[%s412_s3] sm:$0xff]  ;;  %v52_v11 = vld [vmem:[#allocation2 + $0x10] sm:$0xff]  ;;  %v51_v12 = vld [vmem:[#allocation2 + $0x8] sm:$0xff]  ;;  %s327_s3 = scalar_lea.vmem %s243_s1, 256  ;;  %p332_p6 = scmp.lt.s32.totalorder %s243_s1, %s243_s1 }
  0x12   :  { %281 = vmatpush3.msra.mxu1 %v57_v3  ;;  %v54_v9 = vld [vmem:[#allocation2 + $0x20] sm:$0xff]  ;;  %275 = vmatprep.subr.mxu0 %v70_v8  ;;  %p328_p5 = scmp.ne.s32.totalorder %s243_s1, %s327_s3  ;;  %p333_p7 = scmp.lt.s32.totalorder %s327_s3, %s327_s3 }
  0x13   :  { %282 = vmatprep.subr.mxu1 %v56_v4  ;;  %276 = vmatpush3.msra.mxu0 %v70_v8  ;;  %v50_v13 = vld [vmem:[#allocation2] sm:$0xff] }
  0x14   :  { %62 = vperm.xlu1 %306, %v35_v5   ;;  %59 = vperm.xlu0 %305, %v34_v6   ;;  %p334_p8 = por %p333_p7, %p332_p6 }
  0x15   :  { %283 = vmatpush3.msra.mxu1 %v56_v4 }
  0x16   :  { %284 = vmatprep.subr.mxu1 %v55_v7  ;;  %p335_p9 = pnand %p334_p8, %p328_p5 }
  0x17   :  { %285 = vmatpush3.msra.mxu1 %v55_v7 }
  0x18   :  { %286 = vmatprep.subr.mxu1 %v54_v9 }
  0x19   :  { %287 = vmatpush3.msra.mxu1 %v54_v9 }
  0x1a   :  { %288 = vmatprep.subr.mxu1 %v53_v10 }
  0x1b   :  { %289 = vmatpush3.msra.mxu1 %v53_v10 }
  0x1c   :  { %290 = vmatprep.subr.mxu1 %v52_v11 }
  0x1d   :  { %291 = vmatpush3.msra.mxu1 %v52_v11 }
  0x1e   :  { %292 = vmatprep.subr.mxu1 %v51_v12 }
  0x1f   :  { %293 = vmatpush3.msra.mxu1 %v51_v12 }
  0x20   :  { %294 = vmatprep.subr.mxu1 %v50_v13 }
  0x21   :  { %295 = vmatpush3.msra.mxu1 %v50_v13 }
  0x8b   :  { %v43_v16 = vpop.permute.xlu1 %42  ;;  %v40_v17 = vpop.permute.xlu0 %39 }
  0x8c   :  { %vm45_vm1 = vcmp.eq.s32.totalorder %v37_v15, %v43_v16  ;;  %vm44_vm2 = vcmp.eq.s32.totalorder %v37_v15, %v40_v17 }
  0x8d   :  { %v255_v19 = vsel %vm45_vm1, 1.0, %v355_v18  ;;  %v254_v20 = vsel %vm44_vm2, 1.0, %v355_v18 }
  0x8e   :  { %296 = vmatprep.mubr.msk.f32.mxu1 %vm153_vm0, %v254_v20 }
  0x8f   :  { %v63_v21 = vpop.permute.xlu1 %62  ;;  %297 = vmatmul.mubr.msk.f32.vlgmr.msra.gmra.mxu1 %vm153_vm0, %v255_v19  ;;  %v60_v22 = vpop.permute.xlu0 %59 }
  0x90   :  { %vm65_vm4 = vcmp.eq.s32.totalorder %v37_v15, %v63_v21  ;;  %vm64_vm5 = vcmp.eq.s32.totalorder %v37_v15, %v60_v22 }
  0x91   :  { %v257_v23 = vsel %vm65_vm4, 1.0, %v355_v18  ;;  %v256_v24 = vsel %vm64_vm5, 1.0, %v355_v18 }
  0x92   :  { %277 = vmatprep.mubr.msk.f32.mxu0 %vm71_vm3, %v256_v24 }
  0x93   :  { %278 = vmatmul.mubr.msk.f32.vlgmr.msra.gmra.mxu0 %vm71_vm3, %v257_v23 }
 0x14f   :  { %v298_v25 = vpop.f32.mrf.mxu1 }
 0x151   :  { %v226_v28 = vpop.f32.mrf.mxu1 }
 0x153   :  { %v279_v26 = vpop.f32.mrf.mxu0 }
 0x154   :  { %v232_v27 = vadd.f32 %v298_v25, %v279_v26 }
 0x155   :  { %v144_v29 = vpop.f32.mrf.mxu0 }
 0x156   :  { %236 = vst [vmem:[#allocation5 + $0x8] sm:$0xff] %v232_v27  ;;  %v227_v30 = vadd.f32 %v226_v28, %v144_v29 }
 0x158   :  { %235 = vst [vmem:[#allocation5] sm:$0xff] %v227_v30 }
 0x159   :  { %338 = shalt.err (!%p335_p9)
}
 0x15a   :  { %248 = dma.vmem_to_hbm [thread:$0]  %s243_s1, 256, %s413_s4, [#allocation4], %s352_s18, %s352_s18, %s353_s19  }
 0x15b   :  { %349 = dma.done.wait [#allocation4], 256  }
 0x15c   :  { %350 = vsyncadd [#allocation4], 4294967040 }
 0x15d   :  { %252 = vsyncpa [#allocation3], 1 }
 0x15e   :  { %253 = vsyncpa [#allocation4], 1 }

</bundles_post_ra>
